<compile_context>
chip_gen: v7x
topology: tpu7x:2x2x1
jax: 0.10.0
libtpu: 0.0.40
codegen_flags: <defaults>
</compile_context>

<pallas_src>
import functools

import jax
import jax.numpy as jnp
from jax.experimental import pallas as pl
from jax.experimental.pallas import tpu as pltpu


def _round_up(n, m):
    return (n + m - 1) // m * m


# ----------------------------------------------------------------------------
# Pallas kernel: fused causal TRF bank, one time tile per grid step
# ----------------------------------------------------------------------------
def _fused_trf_kernel(halo_ref, cur_ref, w_ref, o_ref, *, n_lags, c_out, halo):
    # halo_ref: (1, C_pad, HALO)          bf16 — last HALO samples of the previous tile
    # cur_ref : (1, C_pad, TT)            bf16 — current time tile
    # w_ref   : (n_lags * C_out, C_pad)   bf16 — lag-stacked fused TRF weight
    # o_ref   : (1, C_out, TT)            f32  — prediction tile
    t_idx = pl.program_id(1)
    tt = cur_ref.shape[-1]

    # Causal boundary: x[:, t] == 0 for t < 0  →  zero the halo on the first tile.
    hal = halo_ref[0]
    hal = jnp.where(t_idx > 0, hal, jnp.zeros_like(hal))            # (C_pad, HALO) bf16

    # Lane-aligned (halo ‖ cur) buffer; ext[:, j] holds global column t0 - halo + j.
    ext = jnp.concatenate([hal, cur_ref[0]], axis=-1)               # (C_pad, HALO+TT) bf16

    # ONE bf16 MXU contraction over K = C_pad (f32 accumulation):
    #     y_full[l*C_out + o, j] = sum_c w[l, o, c] * x[c, t0 - halo + j]
    y_full = jnp.dot(w_ref[...], ext, preferred_element_type=jnp.float32)

    # Output-shift accumulation: pred[o, t] = sum_l y_full[l*C_out + o, halo + t - l]
    acc = y_full[0:c_out, halo:halo + tt]
    for l in range(1, n_lags):
        acc = acc + y_full[l * c_out:(l + 1) * c_out, halo - l:halo - l + tt]
    o_ref[0] = acc


def fused_trf_forward(x, trf_weights, *, t_tile=8192, halo=128):
    """Fused causal linear TRF bank.

    x:           (B, C_total, T) — channel-concatenated inputs of all sub-TRFs
    trf_weights: list of (L_i, C_out, C_in_i); sum(C_in_i) == C_total
    returns      (B, C_out, T) float32, the sum of all sub-TRF predictions.
    """
    B, C_total, T = x.shape
    c_ins = [int(w.shape[2]) for w in trf_weights]
    assert sum(c_ins) == C_total
    C_out = int(trf_weights[0].shape[1])
    assert all(int(w.shape[1]) == C_out for w in trf_weights)
    L = max(int(w.shape[0]) for w in trf_weights)
    assert 1 <= L and L - 1 <= halo, "one 128-lane halo must cover all causal lags"

    # Lag-stacked fused weight: W_stack[l*C_out + o, c] = w_i[l, o, c]
    # (zeros for padded lags / channels of shorter / narrower sub-TRFs).
    C_pad = _round_up(max(C_total, 8), 8)                  # sublane-tile aligned channels
    w_full = jnp.zeros((L, C_out, C_pad), jnp.float32)
    off = 0
    for w, c_in in zip(trf_weights, c_ins):
        w = jnp.asarray(w, jnp.float32)
        w_full = w_full.at[: w.shape[0], :, off:off + c_in].set(w)
        off += c_in
    w_stack = w_full.reshape(L * C_out, C_pad).astype(jnp.bfloat16)

    # bf16 input, channels zero-padded up to C_pad (no time-axis padding at all).
    x_bf = x.astype(jnp.bfloat16)
    if C_pad != C_total:
        x_bf = jnp.pad(x_bf, ((0, 0), (0, C_pad - C_total), (0, 0)))

    # Time tiling: lane-dense TT-wide tiles plus a 128-lane left halo per tile.
    t_tile = int(min(t_tile, _round_up(T, halo)))
    if B == 1 and T > halo:
        # Keep at least 2 grid steps so both v7x TensorCores get work.
        t_tile = min(t_tile, max(halo, _round_up(pl.cdiv(T, 2), halo)))
    assert t_tile % halo == 0
    n_t = pl.cdiv(T, t_tile)
    r = t_tile // halo

    kernel = functools.partial(_fused_trf_kernel, n_lags=L, c_out=C_out, halo=halo)
    flops = 2 * B * n_t * (L * C_out) * C_pad * (halo + t_tile)
    bytes_accessed = (B * C_pad * n_t * (t_tile + halo) * 2      # bf16 cur + halo reads
                      + L * C_out * C_pad * 2                    # bf16 weight
                      + B * C_out * n_t * t_tile * 4)            # f32 output

    return pl.pallas_call(
        kernel,
        out_shape=jax.ShapeDtypeStruct((B, C_out, T), jnp.float32),
        grid_spec=pl.GridSpec(
            grid=(B, n_t),
            in_specs=[
                # left halo: the last 128 samples of the previous time tile
                pl.BlockSpec((1, C_pad, halo),
                             lambda b, t: (b, 0, jnp.maximum(t * r - 1, 0))),
                # current time tile
                pl.BlockSpec((1, C_pad, t_tile), lambda b, t: (b, 0, t)),
                # lag-stacked fused weight, resident across the whole grid
                pl.BlockSpec((L * C_out, C_pad), lambda b, t: (0, 0)),
            ],
            out_specs=pl.BlockSpec((1, C_out, t_tile), lambda b, t: (b, 0, t)),
        ),
        compiler_params=pltpu.CompilerParams(
            dimension_semantics=("parallel", "parallel"),
            vmem_limit_bytes=32 * 1024 * 1024),
        cost_estimate=pl.CostEstimate(
            flops=int(flops), transcendentals=0, bytes_accessed=int(bytes_accessed)),
    )(x_bf, x_bf, w_stack)


# ----------------------------------------------------------------------------
# Composite module: faithful port of TwoMixedTRF.forward (device arg dropped)
# ----------------------------------------------------------------------------
class TwoMixedTRF:
    def __init__(self, trf_weights, feats_keys, t_tile=8192):
        # trf_weights: list of (n_lags, C_out, C_in) arrays, one per sub-TRF
        self.trf_weights = [jnp.asarray(w, jnp.float32) for w in trf_weights]
        self.feats_keys = feats_keys
        self.t_tile = t_tile

    def _gather_trf_input(self, feat_dict, trf_index):
        # Mirrors the per-TRF feature gathering of the PyTorch forward.
        feats_key = self.feats_keys[trf_index]
        feats, n_dict_feat = [], 0
        for feat_key in feats_key:
            feat = feat_dict[feat_key]
            if isinstance(feat, dict):
                n_dict_feat += 1
            feats.append(feat)
        if n_dict_feat > 0:
            assert len(feats) == n_dict_feat
            if len(feats) == 1:
                x = feats[0]['x']
            else:
                # (PyTorch calls torch.equal(timeinfo_0, feat['timeinfo']) and
                #  discards the result; no check is performed here either.)
                x = jnp.concatenate([f['x'] for f in feats], axis=-2)
            # TODO(synk): timeinfo-driven (event-locked) TRF variants are not modeled;
            # the dict path applies the same linear causal temporal conv to x.
            return x
        else:
            minLen = min(f.shape[-1] for f in feats)
            return jnp.concatenate([f[..., :minLen] for f in feats], axis=-2)

    def __call__(self, feat_dict, y):
        xs = [self._gather_trf_input(feat_dict, i)
              for i in range(len(self.trf_weights))]
        # Every sub-TRF here is a causal linear conv (output length == input length),
        # and the module sums predictions after cropping to the common min length.
        # Cropping a causal conv's input gives the identical prefix, so we crop
        # inputs up-front and fuse ALL sub-TRFs into one Pallas call.
        t_common = min(x.shape[-1] for x in xs)
        xs = [x[..., :t_common] for x in xs]
        x_all = jnp.concatenate(xs, axis=-2)               # (B, C_total, t_common)
        pred = fused_trf_forward(x_all, self.trf_weights, t_tile=self.t_tile)
        minLen = min(pred.shape[-1], y.shape[-1])
        return pred[..., :minLen], y[:, :, :minLen]


# ----------------------------------------------------------------------------
# Pure-JAX reference for the TRF conv (correctness check only)
# ----------------------------------------------------------------------------
def trf_ref(x, w):
    B, C_in, T = x.shape
    L, C_out, _ = w.shape
    xp = jnp.pad(x, ((0, 0), (0, 0), (L - 1, 0)))
    out = jnp.zeros((B, C_out, T), jnp.float32)
    for l in range(L):
        out = out + jnp.einsum('oc,bct->bot', w[l],
                               xp[:, :, L - 1 - l:L - 1 - l + T])
    return out


if __name__ == "__main__":
    key = jax.random.PRNGKey(0)
    ks = jax.random.split(key, 8)

    B, T, L, C_OUT = 2, 256, 8, 2

    # --- feature dict (mix of plain tensors and {'x', 'timeinfo'} dicts) ---
    env = jax.random.normal(ks[0], (B, 1, T + 2), jnp.float32)     # tensor, longer
    pitch = jax.random.normal(ks[1], (B, 2, T), jnp.float32)       # tensor
    word_x = jax.random.normal(ks[2], (B, 2, T), jnp.float32)
    phone_x = jax.random.normal(ks[3], (B, 1, T), jnp.float32)
    timeinfo = jnp.broadcast_to(jnp.arange(T, dtype=jnp.float32), (B, 1, T))
    y = jax.random.normal(ks[4], (B, C_OUT, T + 44), jnp.float32)  # target, longer

    feat_dict = {
        "envelope": env,
        "pitch": pitch,
        "word": {"x": word_x, "timeinfo": timeinfo},
        "phone": {"x": phone_x, "timeinfo": timeinfo},
    }
    feats_keys = [("envelope", "pitch"),   # TRF 0: tensor path (crop + concat)
                  ("word", "phone")]       # TRF 1: dict path (concat x's)

    # deterministic "weights" for the two TRF sub-modules
    w0 = 0.1 * jax.random.normal(ks[5], (L, C_OUT, 3), jnp.float32)  # in = 1 + 2
    w1 = 0.1 * jax.random.normal(ks[6], (L, C_OUT, 3), jnp.float32)  # in = 2 + 1

    # --- reference of the composite forward (inputs quantized to bf16 to match
    #     the kernel's bf16 HBM path; accumulation is f32 in both) ---
    q = lambda a: a.astype(jnp.bfloat16).astype(jnp.float32)
    x0 = jnp.concatenate([env[..., :T], pitch[..., :T]], axis=-2)
    x1 = jnp.concatenate([word_x, phone_x], axis=-2)
    ref_pred = trf_ref(q(x0), q(w0)) + trf_ref(q(x1), q(w1))

    # Check both the multi-tile (halo) path and the default big-tile path.
    for tile in (128, 8192):
        model = TwoMixedTRF([w0, w1], feats_keys, t_tile=tile)
        fwd = jax.jit(lambda fd, yy, m=model: m(fd, yy))
        pred, cropedY = fwd(feat_dict, y)
        pred = jax.block_until_ready(pred)
        cropedY = jax.block_until_ready(cropedY)

        assert pred.shape == (B, C_OUT, T)
        assert cropedY.shape == (B, C_OUT, T)
        assert jnp.allclose(pred, ref_pred, atol=1e-2, rtol=1e-2)
        assert jnp.allclose(cropedY, y[:, :, :T])

    print("KERNEL_OK")
</pallas_src>

<mosaic_0001>
module attributes {stable_mosaic.version = 11 : i64} {
  func.func @_fused_trf_kernel(%arg0: i32, %arg1: i32, %arg2: memref<1x8x128xbf16, #tpu.memory_space<vmem>>, %arg3: memref<1x8x128xbf16, #tpu.memory_space<vmem>>, %arg4: memref<16x8xbf16, #tpu.memory_space<vmem>>, %arg5: memref<1x2x128xf32, #tpu.memory_space<vmem>>) attributes {dimension_semantics = [#tpu.dimension_semantics<parallel>, #tpu.dimension_semantics<parallel>], iteration_bounds = array<i64: 2, 2>, scalar_prefetch = 0 : i64, scratch_operands = 0 : i64, tpu.core_type = #tpu.core_type<tc>, window_params = [{transform_indices = @transform_0, window_bounds = array<i64: 1, 8, 128>}, {transform_indices = @transform_1, window_bounds = array<i64: 1, 8, 128>}, {pipeline_mode = #tpu.pipeline_mode<synchronous>, transform_indices = @transform_2, window_bounds = array<i64: 16, 8>}, {transform_indices = @transform_3, window_bounds = array<i64: 1, 2, 128>}]} {
    %c0 = arith.constant 0 : index
    %c0_0 = arith.constant 0 : index
    %c0_1 = arith.constant 0 : index
    %0 = vector.load %arg2[%c0, %c0_0, %c0_1] : memref<1x8x128xbf16, #tpu.memory_space<vmem>>, vector<1x8x128xbf16>
    %1 = vector.shape_cast %0 : vector<1x8x128xbf16> to vector<8x128xbf16>
    %c0_i32 = arith.constant 0 : i32
    %2 = arith.cmpi sgt, %arg1, %c0_i32 : i32
    %cst = arith.constant 0.000000e+00 : bf16
    %3 = vector.broadcast %cst : bf16 to vector<8x128xbf16>
    %4 = arith.select %2, %1, %3 : vector<8x128xbf16>
    %c0_2 = arith.constant 0 : index
    %c0_3 = arith.constant 0 : index
    %c0_4 = arith.constant 0 : index
    %5 = vector.load %arg3[%c0_2, %c0_3, %c0_4] : memref<1x8x128xbf16, #tpu.memory_space<vmem>>, vector<1x8x128xbf16>
    %6 = vector.shape_cast %5 : vector<1x8x128xbf16> to vector<8x128xbf16>
    %7 = tpu.concatenate %4, %6 in 1 : vector<8x128xbf16>, vector<8x128xbf16> -> vector<8x256xbf16>
    %c0_5 = arith.constant 0 : index
    %c0_6 = arith.constant 0 : index
    %8 = vector.load %arg4[%c0_5, %c0_6] : memref<16x8xbf16, #tpu.memory_space<vmem>>, vector<16x8xbf16>
    %cst_7 = arith.constant dense<0.000000e+00> : vector<16x256xf32>
    %9 = tpu.matmul %8, %7, %cst_7 {dimension_numbers = #tpu.dot_dimension_numbers<[1], [0], [0], [1], [0, 0, 1, 1], [], []>} : vector<16x8xbf16>, vector<8x256xbf16>, vector<16x256xf32> -> vector<16x256xf32>
    %10 = vector.extract_strided_slice %9 {offsets = [0, 128], sizes = [2, 128], strides = [1, 1]} : vector<16x256xf32> to vector<2x128xf32>
    %11 = vector.extract_strided_slice %9 {offsets = [2, 127], sizes = [2, 128], strides = [1, 1]} : vector<16x256xf32> to vector<2x128xf32>
    %12 = arith.addf %10, %11 : vector<2x128xf32>
    %13 = vector.extract_strided_slice %9 {offsets = [4, 126], sizes = [2, 128], strides = [1, 1]} : vector<16x256xf32> to vector<2x128xf32>
    %14 = arith.addf %12, %13 : vector<2x128xf32>
    %15 = vector.extract_strided_slice %9 {offsets = [6, 125], sizes = [2, 128], strides = [1, 1]} : vector<16x256xf32> to vector<2x128xf32>
    %16 = arith.addf %14, %15 : vector<2x128xf32>
    %17 = vector.extract_strided_slice %9 {offsets = [8, 124], sizes = [2, 128], strides = [1, 1]} : vector<16x256xf32> to vector<2x128xf32>
    %18 = arith.addf %16, %17 : vector<2x128xf32>
    %19 = vector.extract_strided_slice %9 {offsets = [10, 123], sizes = [2, 128], strides = [1, 1]} : vector<16x256xf32> to vector<2x128xf32>
    %20 = arith.addf %18, %19 : vector<2x128xf32>
    %21 = vector.extract_strided_slice %9 {offsets = [12, 122], sizes = [2, 128], strides = [1, 1]} : vector<16x256xf32> to vector<2x128xf32>
    %22 = arith.addf %20, %21 : vector<2x128xf32>
    %23 = vector.extract_strided_slice %9 {offsets = [14, 121], sizes = [2, 128], strides = [1, 1]} : vector<16x256xf32> to vector<2x128xf32>
    %24 = arith.addf %22, %23 : vector<2x128xf32>
    %c0_8 = arith.constant 0 : index
    %c0_9 = arith.constant 0 : index
    %c0_10 = arith.constant 0 : index
    %25 = vector.load %arg5[%c0_8, %c0_9, %c0_10] : memref<1x2x128xf32, #tpu.memory_space<vmem>>, vector<1x2x128xf32>
    %26 = vector.shape_cast %25 : vector<1x2x128xf32> to vector<2x128xf32>
    %27 = vector.shape_cast %24 : vector<2x128xf32> to vector<1x2x128xf32>
    tpu.vector_store %arg5[%c0_8, %c0_9, %c0_10], %27 {strides = array<i32>} : memref<1x2x128xf32, #tpu.memory_space<vmem>>, vector<1x2x128xf32>,
    return
  }
  func.func @transform_0(%arg0: i32, %arg1: i32) -> (i32, i32, i32) {
    %c1_i32 = arith.constant 1 : i32
    %0 = arith.muli %arg1, %c1_i32 : i32
    %c1_i32_0 = arith.constant 1 : i32
    %1 = arith.subi %0, %c1_i32_0 : i32
    %c0_i32 = arith.constant 0 : i32
    %2 = arith.maxsi %1, %c0_i32 : i32
    %c0_i32_1 = arith.constant 0 : i32
    %c0_i32_2 = arith.constant 0 : i32
    return %arg0, %c0_i32_1, %2 : i32, i32, i32
  }
  func.func @transform_1(%arg0: i32, %arg1: i32) -> (i32, i32, i32) {
    %c0_i32 = arith.constant 0 : i32
    %c0_i32_0 = arith.constant 0 : i32
    return %arg0, %c0_i32, %arg1 : i32, i32, i32
  }
  func.func @transform_2(%arg0: i32, %arg1: i32) -> (i32, i32) {
    %c0_i32 = arith.constant 0 : i32
    %c0_i32_0 = arith.constant 0 : i32
    %c0_i32_1 = arith.constant 0 : i32
    return %c0_i32, %c0_i32_0 : i32, i32
  }
  func.func @transform_3(%arg0: i32, %arg1: i32) -> (i32, i32, i32) {
    %c0_i32 = arith.constant 0 : i32
    %c0_i32_0 = arith.constant 0 : i32
    return %arg0, %c0_i32, %arg1 : i32, i32, i32
  }
}

</mosaic_0001>

<bundles_post_ra>
// kernel: _lambda_.1
= control target key start
LH: loop header
LB: loop body
LE: loop exit
PB: predicated region body
PF: predicated region fallthrough
CT: control target
= control target key end

     0   :  { %8 = vsyncpa [#allocation3], 0  ;;  %s882_s0 = inlined_call_operand.vmem [shape: bf16[2,8,256], index: 0, kind: input, shape index: {}, may-alias: {0,1}]   ;;  %s883_s1 = inlined_call_operand.vmem [shape: bf16[2,8,256], index: 1, kind: input, shape index: {}, may-alias: {0,1}]   ;;  %s884_s2 = inlined_call_operand.vmem [shape: bf16[16,8], index: 2, kind: input, shape index: {}]   ;;  %s885_s3 = inlined_call_operand.hbm [shape: f32[2,2,256], index: 3, kind: output, shape index: {}]  }
   0x1   :  { %10 = vsyncpa [#allocation3 + $0x1], 0  ;;  %s733_s12 = smov 0   ;;  %s735_s13 = smov 0  }
   0x2   :  { %s737_s14 = smov 0   ;;  %s739_s15 = smov 0  }
   0x3   :  { %s741_s16 = smov 0   ;;  %s743_s17 = smov 0  }
   0x4   :  { %s745_s18 = smov 0   ;;  %s747_s19 = smov 0  }
   0x5 LB: > { %s500_s20 = sadd.s32 4294967295, %s702_s19   ;;  %s501_s21 = sadd.s32 4294967294, %s702_s19   ;;  %s702_s19 = sphi %s747_s19, %s16_s19   ;;  %s698_s18 = sphi %s745_s18, %s894_s18   ;;  %s694_s17 = sphi %s743_s17, %s893_s17   ;;  %s690_s16 = sphi %s741_s16, %s892_s16   ;;  %s686_s15 = sphi %s739_s15, %s891_s15   ;;  %s682_s14 = sphi %s737_s14, %s890_s14   ;;  %s678_s13 = sphi %s735_s13, %s889_s13   ;;  %s674_s12 = sphi %s733_s12, %s888_s12  }
   0x6   : > { %s25_s22 = sadd.s32 1, %s694_s17  ;;  %s28_s23 = sadd.s32 1, %s698_s18 }
   0x7   : > { %p26_p0 = scmp.ge.s32.totalorder %s25_s22, 2  ;;  %p130_p1 = scmp.ne.s32.totalorder %s682_s14, %s678_s13 }
   0x8   : > { %p131_p2 = scmp.eq.s32.totalorder %s500_s20, 3  ;;  %p136_p5 = scmp.ne.s32.totalorder %s678_s13, %s674_s12 }
   0x9   : > { %s896_s22 = smov (%p26_p0, %s25_s22), 0  ;;  %s898_s23 = smov (!%p26_p0, %s28_s23), %s698_s18 }
   0xa   : > { %s116_s24 = ssub.s32 %s694_s17, %s896_s22  ;;  %p784_p3 = por %p131_p2, %p130_p1 }
   0xb   : > { %p30_p4 = scmp.ge.s32.totalorder %s898_s23, 2  ;;  %p137_p6 = scmp.eq.s32.totalorder %s501_s21, 3 }
   0xc   : > { %p506_p7 = scmp.ge.s32.totalorder %s702_s19, 1  ;;  %p186_p9 = scmp.lt.s32.totalorder %s702_s19, 5 }
   0xd   : > { %s900_s23 = smov (%p30_p4, %s898_s23), 0  ;;  %p793_p8 = por %p137_p6, %p136_p5 }
   0xe   : > { %s115_s27 = ssub.s32 %s698_s18, %s900_s23  ;;  %s120_s28 = sadd.s32 1, %s682_s14 }
   0xf   : > { %s117_s29 = sor.u32 %s116_s24, %s115_s27  ;;  %p187_p10 = pnand %p506_p7, %p186_p9 }
  0x10   : > { %p118_p11 = scmp.eq.s32.totalorder %s117_s29, 0  ;;  %p227_p12 = scmp.lt.s32.totalorder (!%p187_p10), %s690_s16, 1  ;;  %v704_v0 = vmov (!%p187_p10), 0   ;;  %vm265_vm0 = vcmask (!%p187_p10), 1043456   ;;  %v607_v6 = vld [vmem:[%s884_s2] sm:$0xff] (!%p187_p10)   ;;  %vm261_vm2 = vcmask (!%p187_p10), 64512  }
  0x11   : > { %190 = sbr.rel (%p187_p10) target bundleno = 409 (0x199), region = 32  ;;  %p240_p13 = scmp.lt.s32.totalorder (!%p187_p10), %s686_s15, 1  ;;  %304 = vmatprep.mubr.bf16.mxu0 (!%p187_p10), %v704_v0  ;;  %vm323_vm3 = vcmask (!%p187_p10), 7168   ;;  %vm333_vm4 = vcmask (!%p187_p10), 15360   ;;  %vm343_vm5 = vcmask (!%p187_p10), 23552   ;;  %vm353_vm6 = vcmask (!%p187_p10), 31744  }
  0x12   : > { %s802_s30 = scalar_select %p118_p11, %s682_s14, %s120_s28  }
  0x13   : > { %s508_s4 = sadd.s32 (!%p187_p10), 4294967295, %s686_s15  ;;  %p248_p1 = scmp.gt.s32.totalorder (!%p187_p10), %s686_s15, 0  ;;  %vm363_vm7 = vcmask (!%p187_p10), 39936   ;;  %vm373_vm8 = vcmask (!%p187_p10), 48128   ;;  %vm383_vm9 = vcmask (!%p187_p10), 56320  }
  0x14   : > { %p225_p0 = scmp.gt.s32.totalorder (!%p187_p10), %s508_s4, 0  ;;  %p509_p2 = scmp.lt.s32.totalorder (!%p187_p10), %s508_s4, 1 }
  0x15   : > { %s708_s10 = smov (!%p187_p10), 4   ;;  %s709_s11 = smov (!%p187_p10), 5  }
  0x16   : > { %s522_s28 = sshll.u32 (!%p187_p10), %s690_s16, 1 }
  0x17   : > { %s400_s29 = sadd.s32 (!%p187_p10), %s686_s15, %s522_s28 }
  0x18   : > { %s228_s5 = scalar_select %p227_p12, %s690_s16, 1 }
  0x19   : > { %s241_s6 = scalar_select %p240_p13, %s686_s15, 1 }
  0x1a   : > { %s514_s7 = sshll.u32 %s228_s5, 1  ;;  %s902_s4 = smov (!%p225_p0, %s508_s4), 0 }
  0x1b   : > { %s243_s8 = sadd.s32 %s514_s7, %s241_s6  ;;  %s904_s4 = smov (!%p509_p2, %s902_s4), 1 }
  0x1c   : > { %s517_s9 = sshll.u32 %s243_s8, 2  ;;  %s232_s24 = sadd.s32 %s904_s4, %s514_s7 }
  0x1d   : > { %s245_s20 = scalar_lea.vmem %s883_s1, %s517_s9  ;;  %s515_s27 = sshll.u32 %s232_s24, 2 }
  0x1e   : > { %v253_v1 = vld [vmem:[%s245_s20] sm:$0xf]  ;;  %s249_s21 = scalar_select %p248_p1, 1, 0 }
  0x1f   : > { %519 = vmatprep.subr.msk.bf16.mxu0 %vm265_vm0, %v253_v1  ;;  %s234_s5 = scalar_lea.vmem %s882_s0, %s515_s27  ;;  %s705_s4 = smov 2  }
  0x20   : > { %v250_v2 = vstv %s249_s21  ;;  %v247_v3 = vld [vmem:[%s234_s5] sm:$0xf]  ;;  %s706_s7 = smov 1   ;;  %s707_s9 = smov 3  }
  0x21   : > { %vm251_vm1 = vcmp.eq.s32.totalorder %v250_v2, 1  ;;  %s710_s20 = smov 6   ;;  %s711_s21 = smov 7  }
  0x22   : > { %v252_v4 = vsel %vm251_vm1, %v247_v3, 0  ;;  %s221_s24 = sand.u32 1, %s678_s13   ;;  %s523_s5 = sshll.u32 %s400_s29, 5 }
  0x23   : > { %v267_v5 = vsel %vm265_vm0, %v252_v4, 0  ;;  %s507_s27 = sshll.u32 %s221_s24, 1  ;;  %s389_s15 = scalar_lea.sflag [#allocation3], %s221_s24 }
  0x24   : > { %273 = vmatpush1.bf16.msra.mxu0 %v267_v5  ;;  %s223_s6 = scalar_lea.vmem [#allocation2], %s507_s27 }
  0x25   : > { %s404_s8 = sshll.u32 %s223_s6, 4  ;;  %s829_s8 = int_to_ptr.vmem [resolvable:$true] %s404_s8 }
  0x27   : > { %520 = vmatmul.mubr.msk.bf16.vlgmr.msra.gmra.mrb[0].mxu0 %vm261_vm2, %v607_v6 }
  0xfa   : > { %v306_v7 = vpop.f32.mrb[0].mxu0 }
  0xfb   : > { %v308_v8 = vpop.f32.mrb[1].mxu0  ;;  %v327_v9 = vrot.slane %v306_v7, 4  ;;  %v317_v10 = vrot.slane %v306_v7, 2  ;;  %v337_v13 = vrot.slane %v306_v7, 6 }
  0xfc   : > { %v310_v11 = vpop.f32.mrb[2].mxu0  ;;  %v328_v14 = vrot.slane %v308_v8, 4  ;;  %v338_v15 = vrot.slane %v308_v8, 6  ;;  %v318_v16 = vrot.slane %v308_v8, 2 }
  0xfd   : > { %329 = vrot.lane.b32.xlu1 %v327_v9, %s705_s4  ;;  %319 = vrot.lane.b32.xlu0 %v317_v10, %s706_s7  ;;  %v312_v12 = vpop.f32.mrb[3].mxu0  ;;  %v357_v18 = vrot.slane %v310_v11, 2  ;;  %v367_v20 = vrot.slane %v310_v11, 4  ;;  %v377_v22 = vrot.slane %v310_v11, 6 }
  0xfe   : > { %v358_v17 = vrot.slane %v312_v12, 2  ;;  %v368_v19 = vrot.slane %v312_v12, 4  ;;  %v378_v21 = vrot.slane %v312_v12, 6 }
 0x101   : > { %339 = vrot.lane.b32.xlu0 %v337_v13, %s707_s9  ;;  %331 = vrot.lane.b32.xlu1 %v328_v14, %s705_s4 }
 0x105   : > { %341 = vrot.lane.b32.xlu1 %v338_v15, %s707_s9  ;;  %349 = vrot.lane.b32.xlu0 %v310_v11, %s708_s10  ;;  %s608_s9 = scalar_lea.vmem %s829_s8, 32 }
 0x106   : > { %p609_p4 = scmp.ne.s32.totalorder %s829_s8, %s608_s9 }
 0x108   : > { %p610_p5 = pnand %p609_p4, %p784_p3 }
 0x109   : > { %321 = vrot.lane.b32.xlu0 %v318_v16, %s706_s7  ;;  %351 = vrot.lane.b32.xlu1 %v312_v12, %s708_s10  ;;  %s827_s7 = scalar_lea.hbm %s885_s3, %s523_s5  ;;  %s712_s10 = smov [#allocation2]  }
 0x10a   : > { %p611_p6 = pneg %p610_p5 }
 0x10d   : > { %359 = vrot.lane.b32.xlu0 %v357_v18, %s709_s11  ;;  %361 = vrot.lane.b32.xlu1 %v358_v17, %s709_s11  ;;  %s612_s11 = sshll.u32 %s712_s10, 4  ;;  %s613_s11 = int_to_ptr.vmem [resolvable:$false] %s612_s11 }
 0x10e   : > { %p615_p7 = scmp.lt.s32.totalorder %s829_s8, %s613_s11 }
 0x111   : > { %369 = vrot.lane.b32.xlu0 %v367_v20, %s710_s20  ;;  %371 = vrot.lane.b32.xlu1 %v368_v19, %s710_s20  ;;  %s614_s20 = scalar_lea.vmem %s613_s11, 64 }
 0x112   : > { %p616_p9 = scmp.lt.s32.totalorder %s614_s20, %s608_s9 }
 0x114   : > { %p617_p10 = por %p616_p9, %p615_p7 }
 0x115   : > { %379 = vrot.lane.b32.xlu0 %v377_v22, %s711_s21  ;;  %381 = vrot.lane.b32.xlu1 %v378_v21, %s711_s21 }
 0x116   : > { %p618_p11 = pnand %p617_p10, %p611_p6 }
 0x16f   : > { %v330_v23 = vpop.permute.xlu1 %329  ;;  %v320_v24 = vpop.permute.xlu0 %319 }
 0x173   : > { %v340_v25 = vpop.permute.xlu0 %339  ;;  %v332_v26 = vpop.permute.xlu1 %331 }
 0x174   : > { %v334_v33 = vsel %vm333_vm4, %v330_v23, %v332_v26 }
 0x177   : > { %v342_v27 = vpop.permute.xlu1 %341  ;;  %v350_v28 = vpop.permute.xlu0 %349 }
 0x178   : > { %v344_v37 = vsel %vm343_vm5, %v340_v25, %v342_v27 }
 0x17b   : > { %v322_v29 = vpop.permute.xlu0 %321  ;;  %v352_v30 = vpop.permute.xlu1 %351 }
 0x17c   : > { %v324_v31 = vsel %vm323_vm3, %v320_v24, %v322_v29  ;;  %v354_v39 = vsel %vm353_vm6, %v350_v28, %v352_v30 }
 0x17d   : > { %v326_v32 = vadd.f32 %v324_v31, %v308_v8 }
 0x17f   : > { %v336_v34 = vadd.f32 %v334_v33, %v326_v32  ;;  %v360_v35 = vpop.permute.xlu0 %359  ;;  %v362_v36 = vpop.permute.xlu1 %361 }
 0x180   : > { %v364_v43 = vsel %vm363_vm7, %v360_v35, %v362_v36 }
 0x181   : > { %v346_v38 = vadd.f32 %v344_v37, %v336_v34 }
 0x183   : > { %v356_v40 = vadd.f32 %v354_v39, %v346_v38  ;;  %v370_v41 = vpop.permute.xlu0 %369  ;;  %v372_v42 = vpop.permute.xlu1 %371 }
 0x184   : > { %v374_v45 = vsel %vm373_vm8, %v370_v41, %v372_v42 }
 0x185   : > { %v366_v44 = vadd.f32 %v364_v43, %v356_v40 }
 0x187   : > { %v376_v46 = vadd.f32 %v374_v45, %v366_v44  ;;  %v380_v47 = vpop.permute.xlu0 %379  ;;  %v382_v48 = vpop.permute.xlu1 %381 }
 0x188   : > { %v384_v49 = vsel %vm383_vm9, %v380_v47, %v382_v48 }
 0x189   : > { %v386_v50 = vadd.f32 %v384_v49, %v376_v46 }
 0x18b   : > { %387 = vst [vmem:[%s223_s6] sm:$0x3] %v386_v50 }
 0x18c   : > { %621 = shalt.err (!%p618_p11)
}
 0x18d   : > { %s622_s21 = scalar_lea.hbm %s827_s7, 32  ;;  %s626_s28 = scalar_lea.hbm %s885_s3, 128 }
 0x18e   : > { %p623_p12 = scmp.ne.s32.totalorder %s827_s7, %s622_s21  ;;  %p627_p1 = scmp.lt.u32.totalorder %s827_s7, %s885_s3 }
 0x18f   : > { %p628_p2 = scmp.lt.u32.totalorder %s626_s28, %s622_s21  ;;  %p630_p5 = scmp.lt.u32.totalorder %s622_s21, %s827_s7 }
 0x190   : > { %p624_p13 = pnand %p623_p12, %p784_p3 }
 0x191   : > { %p629_p4 = por %p628_p2, %p627_p1 }
 0x192   : > { %p625_p0 = pneg %p624_p13 }
 0x193   : > { %p631_p6 = por %p630_p5, %p629_p4 }
 0x195   : > { %p632_p7 = pnand %p631_p6, %p625_p0 }
 0x197   : > { %635 = shalt.err (!%p632_p7)
}
 0x198   : > { %528 = dma.vmem_to_hbm [thread:$0]  (%p784_p3), %s829_s8, 32, %s827_s7, %s389_s15  }
 0x199 PF: > { %p534_p9 = scmp.ge.s32.totalorder %s702_s19, 2  ;;  %s416_s6 = sand.u32 1, %s674_s12  }
 0x19a   : > { %s417_s16 = scalar_lea.sflag [#allocation3], %s416_s6 }
 0x19b   : > { %p531_p10 = pnand %p534_p9, %p793_p8 }
 0x19d   : > { %669 = dma.done.wait (!%p531_p10), %s417_s16, 32  }
 0x19e   : > { %671 = vsyncadd (!%p531_p10), %s417_s16, 4294967264  ;;  %s16_s19 = sadd.s32 1, %s702_s19   ;;  %s888_s12 = smov %s678_s13 }
 0x19f   : > { %p13_p11 = scmp.ge.s32.totalorder %s16_s19, 6   ;;  %s889_s13 = smov %s682_s14 }
 0x1a0   : > { %s890_s14 = smov %s802_s30  ;;  %s891_s15 = smov %s694_s17 }
 0x1a1   : > { %s892_s16 = smov %s698_s18  ;;  %s893_s17 = smov %s896_s22 }
 0x1a2   : > { %s894_s18 = smov %s900_s23  ;;  %15 = sbr.rel (!%p13_p11) target bundleno = 5 (0x5), region = 70 }
 0x1a9   :  { %422 = vsyncpa [#allocation3], 1 }
 0x1aa   :  { %424 = vsyncpa [#allocation3 + $0x1], 1 }

</bundles_post_ra>
